<compile_context>
chip_gen: v7x
topology: tpu7x:2x2x1
jax: 0.10.0
libtpu: 0.0.40
codegen_flags: <defaults>
</compile_context>

<pallas_src>
import functools

import jax
import jax.numpy as jnp
from jax.experimental import pallas as pl
from jax.experimental.pallas import tpu as pltpu


def _round_up(x, m):
    return ((x + m - 1) // m) * m


def vae_kernel(x_ref, eps_ref, w1_ref, b1_ref, w2_ref, b2_ref, wh_ref, bh_ref,
               z_ref, mu_ref, lv_ref, *, latent_dim):
    # fc1 + relu   (f32 -> bf16 cast at the MXU boundary, f32 accumulation)
    x = x_ref[...].astype(jnp.bfloat16)
    h1 = jnp.dot(x, w1_ref[...], preferred_element_type=jnp.float32) + b1_ref[...]
    h1 = jnp.maximum(h1, 0.0).astype(jnp.bfloat16)

    # fc2 + relu
    h2 = jnp.dot(h1, w2_ref[...], preferred_element_type=jnp.float32) + b2_ref[...]
    h2 = jnp.maximum(h2, 0.0).astype(jnp.bfloat16)

    # fused heads: one matmul producing [mu | logvar]
    heads = jnp.dot(h2, wh_ref[...], preferred_element_type=jnp.float32) + bh_ref[...]
    mu = heads[:, :latent_dim]
    lv = jnp.maximum(heads[:, latent_dim:], -1.0)   # clamp, as in the PyTorch module

    # reparameterize: z = mu + eps * exp(0.5 * logvar)
    z = mu + eps_ref[...] * jnp.exp(0.5 * lv)

    z_ref[...] = z
    mu_ref[...] = mu
    lv_ref[...] = lv


def vae_forward(x, params, eps, *, block_b=2048):
    """x: (B, input_dim) f32.  eps: (B, latent_dim) f32 standard normal.
    params: dict of f32 Linear weights (see init_params)."""
    B, D = x.shape
    L = params["wmu"].shape[1]

    # Batch tile: large tiles amortize the per-grid-step fixed overhead; clamp to
    # roughly half of the batch so grid >= 2 and both TensorCores engage on v7x.
    tb = min(block_b, max(8, _round_up(-(-B // 2), 8)))
    tb = min(tb, _round_up(B, 8))
    b_pad = _round_up(B, tb)
    n_tiles = b_pad // tb

    if b_pad != B:
        x = jnp.pad(x, ((0, b_pad - B), (0, 0)))
        eps = jnp.pad(eps, ((0, b_pad - B), (0, 0)))

    # bf16 matmul weights; biases stay f32 (added after f32 accumulation).
    w1 = params["w1"].astype(jnp.bfloat16)
    w2 = params["w2"].astype(jnp.bfloat16)
    # Fused mu/logvar head weights/bias.
    wh = jnp.concatenate([params["wmu"], params["wlv"]], axis=1).astype(jnp.bfloat16)
    bh = jnp.concatenate([params["bmu"], params["blv"]], axis=1)
    # TODO(synk): for production latent_dim >= 64, lane-pad wh/bh (and the head
    # slices / outputs) to 128-lane multiples so the final stores lower to unmasked vst.

    kernel = functools.partial(vae_kernel, latent_dim=L)

    def tiled(shape):
        return pl.BlockSpec(shape, lambda b: (b, 0))

    def resident(shape):
        # Full-array block with constant block index -> stays VMEM-resident across
        # all batch tiles (no re-fetch per grid step).
        return pl.BlockSpec(shape, lambda b: (0, 0))

    cost = pl.CostEstimate(
        flops=2 * b_pad * (D * 64 + 64 * 32 + 32 * 2 * L),
        transcendentals=b_pad * L,
        bytes_accessed=4 * (b_pad * (D + 4 * L)
                            + D * 64 + 64 * 32 + 32 * 2 * L + 64 + 32 + 2 * L),
    )

    out_sds = jax.ShapeDtypeStruct((b_pad, L), jnp.float32)
    # VMEM note: at tb=2048, D=16, L=8 the double-buffered tiles are <1 MiB total,
    # comfortably inside the default scoped VMEM on v5e/v6e/v7x; raise
    # pltpu.CompilerParams(vmem_limit_bytes=...) only if tb/D/L are pushed much larger.
    z, mu, logvar = pl.pallas_call(
        kernel,
        out_shape=(out_sds, out_sds, out_sds),
        grid_spec=pltpu.PrefetchScalarGridSpec(
            num_scalar_prefetch=0,
            grid=(n_tiles,),
            in_specs=[
                tiled((tb, D)),                     # x
                tiled((tb, L)),                     # eps
                resident(w1.shape), resident(params["b1"].shape),
                resident(w2.shape), resident(params["b2"].shape),
                resident(wh.shape), resident(bh.shape),
            ],
            out_specs=(tiled((tb, L)), tiled((tb, L)), tiled((tb, L))),
        ),
        compiler_params=pltpu.CompilerParams(
            dimension_semantics=("parallel",),      # batch tiles -> both TCs on v7x
        ),
        cost_estimate=cost,
    )(x, eps, w1, params["b1"], w2, params["b2"], wh, bh)

    if b_pad != B:
        z, mu, logvar = z[:B], mu[:B], logvar[:B]
    return z, mu, logvar


def init_params(key, input_dim, latent_dim):
    """Deterministic synthetic parameters (shapes match the nn.Linear layers)."""
    ks = jax.random.split(key, 8)

    def linear(kw, kb, fan_in, fan_out):
        bound = 1.0 / jnp.sqrt(fan_in)
        w = jax.random.uniform(kw, (fan_in, fan_out), jnp.float32, -bound, bound)
        b = jax.random.uniform(kb, (1, fan_out), jnp.float32, -bound, bound)
        return w, b

    w1, b1 = linear(ks[0], ks[1], input_dim, 64)
    w2, b2 = linear(ks[2], ks[3], 64, 32)
    wmu, bmu = linear(ks[4], ks[5], 32, latent_dim)
    wlv, blv = linear(ks[6], ks[7], 32, latent_dim)
    return dict(w1=w1, b1=b1, w2=w2, b2=b2,
                wmu=wmu, bmu=bmu, wlv=wlv, blv=blv)


if __name__ == "__main__":
    batch = 8
    input_dim = 16
    latent_dim = 8

    key = jax.random.PRNGKey(0)
    k_params, k_x, k_eps = jax.random.split(key, 3)

    params = init_params(k_params, input_dim, latent_dim)
    x = jax.random.normal(k_x, (batch, input_dim), dtype=jnp.float32)
    eps = jax.random.normal(k_eps, (batch, latent_dim), dtype=jnp.float32)

    z, mu, logvar = vae_forward(x, params, eps)
    jax.block_until_ready((z, mu, logvar))

    # --- Reference 1: exact mirror of the kernel numerics (bf16 dot inputs, f32 accum).
    def bf16_dot(a, w):
        return jnp.dot(a.astype(jnp.bfloat16), w.astype(jnp.bfloat16),
                       preferred_element_type=jnp.float32)

    h1 = jnp.maximum(bf16_dot(x, params["w1"]) + params["b1"], 0.0)
    h2 = jnp.maximum(bf16_dot(h1, params["w2"]) + params["b2"], 0.0)
    mu_ref = bf16_dot(h2, params["wmu"]) + params["bmu"]
    lv_ref = jnp.maximum(bf16_dot(h2, params["wlv"]) + params["blv"], -1.0)
    z_ref = mu_ref + eps * jnp.exp(0.5 * lv_ref)

    assert jnp.allclose(mu, mu_ref, atol=2e-3, rtol=2e-3), "mu mismatch"
    assert jnp.allclose(logvar, lv_ref, atol=2e-3, rtol=2e-3), "logvar mismatch"
    assert jnp.allclose(z, z_ref, atol=2e-3, rtol=2e-3), "z mismatch"

    # --- Reference 2: full-f32 forward (module semantics; loose tol for bf16 rounding).
    h1f = jnp.maximum(x @ params["w1"] + params["b1"], 0.0)
    h2f = jnp.maximum(h1f @ params["w2"] + params["b2"], 0.0)
    mu_f = h2f @ params["wmu"] + params["bmu"]
    lv_f = jnp.maximum(h2f @ params["wlv"] + params["blv"], -1.0)
    assert jnp.allclose(mu, mu_f, atol=0.1, rtol=0.1), "mu far from f32 reference"
    assert jnp.allclose(logvar, lv_f, atol=0.1, rtol=0.1), "logvar far from f32 reference"
    assert bool(jnp.all(jnp.isfinite(z))), "non-finite z"

    print("KERNEL_OK")
</pallas_src>

<mosaic_0001>
module attributes {stable_mosaic.version = 11 : i64} {
  func.func @vae_kernel(%arg0: i32, %arg1: memref<8x16xf32, #tpu.memory_space<vmem>>, %arg2: memref<8x8xf32, #tpu.memory_space<vmem>>, %arg3: memref<16x64xbf16, #tpu.memory_space<vmem>>, %arg4: memref<1x64xf32, #tpu.memory_space<vmem>>, %arg5: memref<64x32xbf16, #tpu.memory_space<vmem>>, %arg6: memref<1x32xf32, #tpu.memory_space<vmem>>, %arg7: memref<32x16xbf16, #tpu.memory_space<vmem>>, %arg8: memref<1x16xf32, #tpu.memory_space<vmem>>, %arg9: memref<8x8xf32, #tpu.memory_space<vmem>>, %arg10: memref<8x8xf32, #tpu.memory_space<vmem>>, %arg11: memref<8x8xf32, #tpu.memory_space<vmem>>) attributes {dimension_semantics = [#tpu.dimension_semantics<parallel>], iteration_bounds = array<i64: 1>, scalar_prefetch = 0 : i64, scratch_operands = 0 : i64, tpu.core_type = #tpu.core_type<tc>, window_params = [{transform_indices = @transform_0, window_bounds = array<i64: 8, 16>}, {transform_indices = @transform_1, window_bounds = array<i64: 8, 8>}, {pipeline_mode = #tpu.pipeline_mode<synchronous>, transform_indices = @transform_2, window_bounds = array<i64: 16, 64>}, {pipeline_mode = #tpu.pipeline_mode<synchronous>, transform_indices = @transform_3, window_bounds = array<i64: 1, 64>}, {pipeline_mode = #tpu.pipeline_mode<synchronous>, transform_indices = @transform_4, window_bounds = array<i64: 64, 32>}, {pipeline_mode = #tpu.pipeline_mode<synchronous>, transform_indices = @transform_5, window_bounds = array<i64: 1, 32>}, {pipeline_mode = #tpu.pipeline_mode<synchronous>, transform_indices = @transform_6, window_bounds = array<i64: 32, 16>}, {pipeline_mode = #tpu.pipeline_mode<synchronous>, transform_indices = @transform_7, window_bounds = array<i64: 1, 16>}, {transform_indices = @transform_8, window_bounds = array<i64: 8, 8>}, {transform_indices = @transform_9, window_bounds = array<i64: 8, 8>}, {transform_indices = @transform_10, window_bounds = array<i64: 8, 8>}]} {
    %c0 = arith.constant 0 : index
    %c0_0 = arith.constant 0 : index
    %0 = vector.load %arg1[%c0, %c0_0] : memref<8x16xf32, #tpu.memory_space<vmem>>, vector<8x16xf32>
    %1 = arith.truncf %0 : vector<8x16xf32> to vector<8x16xbf16>
    %c0_1 = arith.constant 0 : index
    %c0_2 = arith.constant 0 : index
    %2 = vector.load %arg3[%c0_1, %c0_2] : memref<16x64xbf16, #tpu.memory_space<vmem>>, vector<16x64xbf16>
    %cst = arith.constant dense<0.000000e+00> : vector<8x64xf32>
    %3 = tpu.matmul %1, %2, %cst {dimension_numbers = #tpu.dot_dimension_numbers<[1], [0], [0], [1], [0, 0, 1, 1], [], []>} : vector<8x16xbf16>, vector<16x64xbf16>, vector<8x64xf32> -> vector<8x64xf32>
    %c0_3 = arith.constant 0 : index
    %c0_4 = arith.constant 0 : index
    %4 = vector.load %arg4[%c0_3, %c0_4] : memref<1x64xf32, #tpu.memory_space<vmem>>, vector<1x64xf32>
    %5 = vector.broadcast %4 : vector<1x64xf32> to vector<8x64xf32>
    %6 = arith.addf %3, %5 : vector<8x64xf32>
    %cst_5 = arith.constant 0.000000e+00 : f32
    %7 = vector.broadcast %cst_5 : f32 to vector<8x64xf32>
    %8 = arith.maximumf %6, %7 : vector<8x64xf32>
    %9 = arith.truncf %8 : vector<8x64xf32> to vector<8x64xbf16>
    %c0_6 = arith.constant 0 : index
    %c0_7 = arith.constant 0 : index
    %10 = vector.load %arg5[%c0_6, %c0_7] : memref<64x32xbf16, #tpu.memory_space<vmem>>, vector<64x32xbf16>
    %cst_8 = arith.constant dense<0.000000e+00> : vector<8x32xf32>
    %11 = tpu.matmul %9, %10, %cst_8 {dimension_numbers = #tpu.dot_dimension_numbers<[1], [0], [0], [1], [0, 0, 1, 1], [], []>} : vector<8x64xbf16>, vector<64x32xbf16>, vector<8x32xf32> -> vector<8x32xf32>
    %c0_9 = arith.constant 0 : index
    %c0_10 = arith.constant 0 : index
    %12 = vector.load %arg6[%c0_9, %c0_10] : memref<1x32xf32, #tpu.memory_space<vmem>>, vector<1x32xf32>
    %13 = vector.broadcast %12 : vector<1x32xf32> to vector<8x32xf32>
    %14 = arith.addf %11, %13 : vector<8x32xf32>
    %cst_11 = arith.constant 0.000000e+00 : f32
    %15 = vector.broadcast %cst_11 : f32 to vector<8x32xf32>
    %16 = arith.maximumf %14, %15 : vector<8x32xf32>
    %17 = arith.truncf %16 : vector<8x32xf32> to vector<8x32xbf16>
    %c0_12 = arith.constant 0 : index
    %c0_13 = arith.constant 0 : index
    %18 = vector.load %arg7[%c0_12, %c0_13] : memref<32x16xbf16, #tpu.memory_space<vmem>>, vector<32x16xbf16>
    %cst_14 = arith.constant dense<0.000000e+00> : vector<8x16xf32>
    %19 = tpu.matmul %17, %18, %cst_14 {dimension_numbers = #tpu.dot_dimension_numbers<[1], [0], [0], [1], [0, 0, 1, 1], [], []>} : vector<8x32xbf16>, vector<32x16xbf16>, vector<8x16xf32> -> vector<8x16xf32>
    %c0_15 = arith.constant 0 : index
    %c0_16 = arith.constant 0 : index
    %20 = vector.load %arg8[%c0_15, %c0_16] : memref<1x16xf32, #tpu.memory_space<vmem>>, vector<1x16xf32>
    %21 = vector.broadcast %20 : vector<1x16xf32> to vector<8x16xf32>
    %22 = arith.addf %19, %21 : vector<8x16xf32>
    %23 = vector.extract_strided_slice %22 {offsets = [0, 0], sizes = [8, 8], strides = [1, 1]} : vector<8x16xf32> to vector<8x8xf32>
    %24 = vector.extract_strided_slice %22 {offsets = [0, 8], sizes = [8, 8], strides = [1, 1]} : vector<8x16xf32> to vector<8x8xf32>
    %cst_17 = arith.constant -1.000000e+00 : f32
    %25 = vector.broadcast %cst_17 : f32 to vector<8x8xf32>
    %26 = arith.maximumf %24, %25 : vector<8x8xf32>
    %c0_18 = arith.constant 0 : index
    %c0_19 = arith.constant 0 : index
    %27 = vector.load %arg2[%c0_18, %c0_19] : memref<8x8xf32, #tpu.memory_space<vmem>>, vector<8x8xf32>
    %cst_20 = arith.constant 5.000000e-01 : f32
    %28 = vector.broadcast %cst_20 : f32 to vector<8x8xf32>
    %29 = arith.mulf %28, %26 : vector<8x8xf32>
    %30 = math.exp %29 : vector<8x8xf32>
    %31 = arith.mulf %27, %30 : vector<8x8xf32>
    %32 = arith.addf %23, %31 : vector<8x8xf32>
    %c0_21 = arith.constant 0 : index
    %c0_22 = arith.constant 0 : index
    %33 = vector.load %arg9[%c0_21, %c0_22] : memref<8x8xf32, #tpu.memory_space<vmem>>, vector<8x8xf32>
    tpu.vector_store %arg9[%c0_21, %c0_22], %32 {strides = array<i32>} : memref<8x8xf32, #tpu.memory_space<vmem>>, vector<8x8xf32>,
    %c0_23 = arith.constant 0 : index
    %c0_24 = arith.constant 0 : index
    %34 = vector.load %arg10[%c0_23, %c0_24] : memref<8x8xf32, #tpu.memory_space<vmem>>, vector<8x8xf32>
    tpu.vector_store %arg10[%c0_23, %c0_24], %23 {strides = array<i32>} : memref<8x8xf32, #tpu.memory_space<vmem>>, vector<8x8xf32>,
    %c0_25 = arith.constant 0 : index
    %c0_26 = arith.constant 0 : index
    %35 = vector.load %arg11[%c0_25, %c0_26] : memref<8x8xf32, #tpu.memory_space<vmem>>, vector<8x8xf32>
    tpu.vector_store %arg11[%c0_25, %c0_26], %26 {strides = array<i32>} : memref<8x8xf32, #tpu.memory_space<vmem>>, vector<8x8xf32>,
    return
  }
  func.func @transform_0(%arg0: i32) -> (i32, i32) {
    %c0_i32 = arith.constant 0 : i32
    %c0_i32_0 = arith.constant 0 : i32
    return %arg0, %c0_i32 : i32, i32
  }
  func.func @transform_1(%arg0: i32) -> (i32, i32) {
    %c0_i32 = arith.constant 0 : i32
    %c0_i32_0 = arith.constant 0 : i32
    return %arg0, %c0_i32 : i32, i32
  }
  func.func @transform_2(%arg0: i32) -> (i32, i32) {
    %c0_i32 = arith.constant 0 : i32
    %c0_i32_0 = arith.constant 0 : i32
    %c0_i32_1 = arith.constant 0 : i32
    return %c0_i32, %c0_i32_0 : i32, i32
  }
  func.func @transform_3(%arg0: i32) -> (i32, i32) {
    %c0_i32 = arith.constant 0 : i32
    %c0_i32_0 = arith.constant 0 : i32
    %c0_i32_1 = arith.constant 0 : i32
    return %c0_i32, %c0_i32_0 : i32, i32
  }
  func.func @transform_4(%arg0: i32) -> (i32, i32) {
    %c0_i32 = arith.constant 0 : i32
    %c0_i32_0 = arith.constant 0 : i32
    %c0_i32_1 = arith.constant 0 : i32
    return %c0_i32, %c0_i32_0 : i32, i32
  }
  func.func @transform_5(%arg0: i32) -> (i32, i32) {
    %c0_i32 = arith.constant 0 : i32
    %c0_i32_0 = arith.constant 0 : i32
    %c0_i32_1 = arith.constant 0 : i32
    return %c0_i32, %c0_i32_0 : i32, i32
  }
  func.func @transform_6(%arg0: i32) -> (i32, i32) {
    %c0_i32 = arith.constant 0 : i32
    %c0_i32_0 = arith.constant 0 : i32
    %c0_i32_1 = arith.constant 0 : i32
    return %c0_i32, %c0_i32_0 : i32, i32
  }
  func.func @transform_7(%arg0: i32) -> (i32, i32) {
    %c0_i32 = arith.constant 0 : i32
    %c0_i32_0 = arith.constant 0 : i32
    %c0_i32_1 = arith.constant 0 : i32
    return %c0_i32, %c0_i32_0 : i32, i32
  }
  func.func @transform_8(%arg0: i32) -> (i32, i32) {
    %c0_i32 = arith.constant 0 : i32
    %c0_i32_0 = arith.constant 0 : i32
    return %arg0, %c0_i32 : i32, i32
  }
  func.func @transform_9(%arg0: i32) -> (i32, i32) {
    %c0_i32 = arith.constant 0 : i32
    %c0_i32_0 = arith.constant 0 : i32
    return %arg0, %c0_i32 : i32, i32
  }
  func.func @transform_10(%arg0: i32) -> (i32, i32) {
    %c0_i32 = arith.constant 0 : i32
    %c0_i32_0 = arith.constant 0 : i32
    return %arg0, %c0_i32 : i32, i32
  }
}

</mosaic_0001>

<bundles_post_ra>
// kernel: tpu_custom_call.1
= control target key start
LH: loop header
LB: loop body
LE: loop exit
PB: predicated region body
PF: predicated region fallthrough
CT: control target
= control target key end

     0   :  { %16 = vsyncpa [#allocation3], 0  ;;  %v444_v1 = vmov 0.0   ;;  %vm52_vm0 = vcmask 130048   ;;  %vm445_vm1 = vmmov 0   ;;  %s580_s0 = inlined_call_operand.vmem [shape: f32[8,16], index: 0, kind: input, shape index: {}]   ;;  %s581_s1 = inlined_call_operand.vmem [shape: f32[8,8], index: 1, kind: input, shape index: {}]   ;;  %s582_s2 = inlined_call_operand.vmem [shape: bf16[16,64], index: 2, kind: input, shape index: {}]   ;;  %s583_s3 = inlined_call_operand.vmem [shape: f32[1,64], index: 3, kind: input, shape index: {}]   ;;  %s584_s4 = inlined_call_operand.vmem [shape: bf16[64,32], index: 4, kind: input, shape index: {}]   ;;  %s585_s5 = inlined_call_operand.vmem [shape: f32[1,32], index: 5, kind: input, shape index: {}]   ;;  %s586_s6 = inlined_call_operand.vmem [shape: bf16[32,16], index: 6, kind: input, shape index: {}]   ;;  %s587_s7 = inlined_call_operand.vmem [shape: f32[1,16], index: 7, kind: input, shape index: {}]   ;;  %s588_s8 = inlined_call_operand.hbm [shape: f32[8,8], index: 8, kind: output, shape index: {0}]   ;;  %s589_s9 = inlined_call_operand.hbm [shape: f32[8,8], index: 9, kind: output, shape index: {1}]   ;;  %s590_s10 = inlined_call_operand.hbm [shape: f32[8,8], index: 10, kind: output, shape index: {2}]  }
   0x1   :  { %v365_v0 = vld [vmem:[%s582_s2] sm:$0xff]   ;;  %333 = vmatprep.subr.bf16.mxu0 %v444_v1  ;;  %339 = vmatprep.subr.bf16.mxu1 %v444_v1  ;;  %v367_v5 = vld [vmem:[%s584_s4 + $0x8] sm:$0xff]  }
   0x2   :  { %v35_v2 = vld [vmem:[%s580_s0] sm:$0xff]  ;;  %334 = vmatpush3.bf16.msra.mxu0 %v365_v0  ;;  %335 = vmatprep.mubr.msk.bf16.mxu0 %vm445_vm1, %v444_v1 }
   0x3   :  { %v366_v3 = vld [vmem:[%s584_s4] sm:$0xff]   ;;  %v36_v4 = vpack.c.bf16 %v35_v2, %v35_v2  ;;  %347 = vmatprep.mubr.msk.bf16.mxu1 %vm445_vm1, %v444_v1  ;;  %351 = vmatprep.subr.bf16.mxu0 %v444_v1 }
   0x4   :  { %340 = vmatpush3.bf16.msra.mxu1 %v366_v3 }
   0x5   :  { %341 = vmatprep.subr.bf16.mxu1 %v444_v1  ;;  %336 = vmatmul.mubr.msk.bf16.vlgmr.msra.gmra.mrb[0].mxu0 %vm52_vm0, %v36_v4 }
   0x6   :  { %355 = vmatprep.mubr.msk.bf16.mxu0 %vm445_vm1, %v444_v1 }
   0x7   :  { %17 = vsyncpa [#allocation5], 0  ;;  %v368_v6 = vld [vmem:[%s584_s4 + $0x10] sm:$0xff]   ;;  %v369_v7 = vld [vmem:[%s584_s4 + $0x18] sm:$0xff]   ;;  %vm137_vm2 = vcmask 523264   ;;  %vm206_vm3 = vcmask 261120  }
   0x8   :  { %342 = vmatpush3.bf16.msra.mxu1 %v367_v5  ;;  %v370_v8 = vld [vmem:[%s586_s6] sm:$0xff]   ;;  %v371_v17 = vld [vmem:[%s586_s6 + $0x8] sm:$0xff]   ;;  %vm261_vm4 = vcmask 64512  }
   0x9   :  { %343 = vmatprep.subr.bf16.mxu1 %v444_v1  ;;  %352 = vmatpush3.bf16.msra.mxu0 %v370_v8  ;;  %v310_v9 = vld [vmem:[%s583_s3] ss:$0 sm:$0xff] }
   0xa   :  { %353 = vmatprep.subr.bf16.mxu0 %v444_v1  ;;  %v313_v18 = vld [vmem:[%s585_s5] ss:$0 sm:$0xff]  ;;  %s446_s5 = smov [#allocation4]  }
   0xb   :  { %v319_v26 = vld [vmem:[%s587_s7] ss:$0 sm:$0xff]  ;;  %s285_s6 = sshll.u32 %s446_s5, 4  ;;  %s286_s6 = int_to_ptr.vmem [resolvable:$true] %s285_s6 }
   0xc   :  { %344 = vmatpush3.bf16.msra.mxu1 %v368_v6  ;;  %s374_s11 = scalar_lea.vmem %s286_s6, 128  ;;  %p379_p1 = scmp.lt.s32.totalorder %s286_s6, %s286_s6 }
   0xd   :  { %345 = vmatprep.subr.bf16.mxu1 %v444_v1  ;;  %354 = vmatpush3.bf16.msra.mxu0 %v371_v17  ;;  %p375_p0 = scmp.ne.s32.totalorder %s286_s6, %s374_s11  ;;  %p380_p2 = scmp.lt.s32.totalorder %s374_s11, %s374_s11 }
   0xf   :  { %p381_p3 = por %p380_p2, %p379_p1 }
  0x10   :  { %346 = vmatpush3.bf16.msra.mxu1 %v369_v7 }
  0x11   :  { %p382_p4 = pnand %p381_p3, %p375_p0 }
  0xd8   :  { %v90_v10 = vpop.f32.mrb[0].mxu0 }
  0xd9   :  { %v91_v11 = vadd.f32 %v310_v9, %v90_v10  ;;  %v337_v12 = vpop.f32.mrb[1].mxu0 }
  0xda   :  { %v93_v13 = vpop.f32.mrb[2].mxu0 }
  0xdb   :  { %v96_v14 = vmax.f32 %v91_v11, 0.0  ;;  %v338_v15 = vpop.f32.mrb[3].mxu0 }
  0xdd   :  { %v97_v16 = vpack.c.bf16 %v96_v14, %v96_v14 }
  0xdf   :  { %348 = vmatmul.mubr.msk.bf16.vlgmr.msra.gmra.mrb[0].mxu1 %vm137_vm2, %v97_v16 }
 0x1b2   :  { %v175_v19 = vpop.f32.mrb[0].mxu1 }
 0x1b3   :  { %v176_v20 = vadd.f32 %v313_v18, %v175_v19  ;;  %v349_v21 = vpop.f32.mrb[1].mxu1 }
 0x1b4   :  { %v178_v22 = vpop.f32.mrb[2].mxu1 }
 0x1b5   :  { %v181_v23 = vmax.f32 %v176_v20, 0.0  ;;  %v350_v24 = vpop.f32.mrb[3].mxu1 }
 0x1b7   :  { %v182_v25 = vpack.c.bf16 %v181_v23, %v181_v23 }
 0x1b9   :  { %356 = vmatmul.mubr.msk.bf16.vlgmr.msra.gmra.mrb[4].mxu0 %vm206_vm3, %v182_v25 }
 0x28c   :  { %v244_v27 = vpop.f32.mrb[4].mxu0 }
 0x28d   :  { %v245_v28 = vadd.f32 %v319_v26, %v244_v27  ;;  %v357_v29 = vpop.f32.mrb[5].mxu0 }
 0x28e   :  { %v247_v30 = vpop.f32.mrb[6].mxu0 }
 0x28f   :  { %v250_v31 = vmax.f32 %v245_v28, -1.0  ;;  %v358_v32 = vpop.f32.mrb[7].mxu0  ;;  %263 = vst.msk [vmem:[#allocation4] sm:$0xff] %vm261_vm4, %v245_v28 }
 0x291   :  { %v252_v33 = vmul.f32 0.5, %v250_v31 }
 0x293   :  { %v253_v34 = vmul.f32 1.442695, %v252_v33 }
 0x295   :  { %372 = vpow2.f32 %v253_v34 }
 0x296   :  { %385 = shalt.err (!%p382_p4)
}
 0x297   :  { %s386_s13 = scalar_lea.hbm %s589_s9, 128 }
 0x298   :  { %p387_p5 = scmp.ne.s32.totalorder %s589_s9, %s386_s13  ;;  %p390_p6 = scmp.lt.u32.totalorder %s386_s13, %s589_s9 }
 0x29a   :  { %p392_p7 = pnand %p390_p6, %p387_p5 }
 0x29c   :  { %395 = shalt.err (!%p392_p7)
}
 0x29d   :  { %288 = dma.vmem_to_hbm [thread:$0]  %s286_s6, 128, %s589_s9, [#allocation5]   ;;  %v251_v36 = vld [vmem:[%s581_s1] sm:$0xff] }
 0x29e   :  { %s447_s20 = smov 120   ;;  %s448_s21 = smov [#allocation2]  }
 0x29f   :  { %v373_v35 = vpop.eup %372  ;;  %s275_s22 = sshll.u32 %s448_s21, 4  ;;  %s449_s23 = smov [#allocation6]   ;;  %s276_s22 = int_to_ptr.vmem [resolvable:$true] %s275_s22 }
 0x2a0   :  { %256 = vrot.lane.b32.xlu0 %v373_v35, %s447_s20  ;;  %s295_s24 = sshll.u32 %s449_s23, 4  ;;  %s396_s9 = scalar_lea.vmem %s276_s22, 128  ;;  %s296_s24 = int_to_ptr.vmem [resolvable:$true] %s295_s24 }
 0x2a1   :  { %p397_p8 = scmp.ne.s32.totalorder %s276_s22, %s396_s9  ;;  %p401_p9 = scmp.lt.s32.totalorder %s276_s22, %s276_s22 }
 0x2a2   :  { %p402_p10 = scmp.lt.s32.totalorder %s396_s9, %s396_s9 }
 0x2a4   :  { %265 = vrot.lane.b32.xlu0 %v250_v31, %s447_s20  ;;  %p403_p11 = por %p402_p10, %p401_p9 }
 0x2a6   :  { %p404_p12 = pnand %p403_p11, %p397_p8 }
 0x312   :  { %v257_v37 = vpop.permute.xlu0 %256 }
 0x313   :  { %v259_v38 = vmul.f32 %v257_v37, %v251_v36 }
 0x315   :  { %v260_v39 = vadd.f32 %v259_v38, %v245_v28 }
 0x316   :  { %v266_v40 = vpop.permute.xlu0 %265 }
 0x317   :  { %268 = vst.msk [vmem:[#allocation6] sm:$0xff] %vm261_vm4, %v266_v40  ;;  %262 = vst.msk [vmem:[#allocation2] sm:$0xff] %vm261_vm4, %v260_v39 }
 0x318   :  { %407 = shalt.err (!%p404_p12)
}
 0x319   :  { %s408_s26 = scalar_lea.hbm %s588_s8, 128 }
 0x31a   :  { %p409_p13 = scmp.ne.s32.totalorder %s588_s8, %s408_s26  ;;  %p412_p0 = scmp.lt.u32.totalorder %s408_s26, %s588_s8 }
 0x31c   :  { %p414_p1 = pnand %p412_p0, %p409_p13 }
 0x31e   :  { %417 = shalt.err (!%p414_p1)
}
 0x31f   :  { %278 = dma.vmem_to_hbm [thread:$0]  %s276_s22, 128, %s588_s8, [#allocation3]  }
 0x320   :  { %s418_s5 = scalar_lea.vmem %s296_s24, 128  ;;  %p423_p3 = scmp.lt.s32.totalorder %s296_s24, %s296_s24 }
 0x321   :  { %p419_p2 = scmp.ne.s32.totalorder %s296_s24, %s418_s5  ;;  %p424_p4 = scmp.lt.s32.totalorder %s418_s5, %s418_s5 }
 0x323   :  { %p425_p5 = por %p424_p4, %p423_p3 }
 0x325   :  { %p426_p6 = pnand %p425_p5, %p419_p2 }
 0x327   :  { %429 = shalt.err (!%p426_p6)
}
 0x328   :  { %s430_s7 = scalar_lea.hbm %s590_s10, 128 }
 0x329   :  { %p431_p7 = scmp.ne.s32.totalorder %s590_s10, %s430_s7  ;;  %p434_p8 = scmp.lt.u32.totalorder %s430_s7, %s590_s10 }
 0x32b   :  { %p436_p9 = pnand %p434_p8, %p431_p7 }
 0x32d   :  { %439 = shalt.err (!%p436_p9)
}
 0x32e   :  { %298 = dma.vmem_to_hbm [thread:$0]  %s296_s24, 128, %s590_s10, [#allocation5]  }
 0x32f   :  { %440 = dma.done.wait [#allocation3], 128  }
 0x330   :  { %441 = vsyncadd [#allocation3], 4294967168 }
 0x331   :  { %442 = dma.done.wait [#allocation5], 256  }
 0x332   :  { %443 = vsyncadd [#allocation5], 4294967040 }
 0x333   :  { %308 = vsyncpa [#allocation3], 1 }
 0x334   :  { %309 = vsyncpa [#allocation5], 1 }

</bundles_post_ra>
